<compile_context>
chip_gen: v7x
topology: tpu7x:2x2x1
jax: 0.10.0
libtpu: 0.0.40
codegen_flags: <defaults>
</compile_context>

<pallas_src>
import functools

import jax
import jax.numpy as jnp
import numpy as np
from jax import lax
from jax.experimental import pallas as pl
from jax.experimental.pallas import tpu as pltpu

IM_MEAN = jnp.array([0.485, 0.456, 0.406], jnp.float32)
IM_STD = jnp.array([0.229, 0.224, 0.225], jnp.float32)


def _boundary_masks(h, w):
    """(9, H*W) f32 masks: mask[t, p] == 1 iff 3x3 tap t at output pixel p stays in-image."""
    yy = jnp.arange(h).reshape(h, 1)
    xx = jnp.arange(w).reshape(1, w)
    rows = []
    for t in range(9):
        dy, dx = t // 3 - 1, t % 3 - 1
        ok = (yy + dy >= 0) & (yy + dy < h) & (xx + dx >= 0) & (xx + dx < w)
        rows.append(ok.reshape(1, h * w))
    return jnp.concatenate(rows, axis=0).astype(jnp.float32)


# ------------------------------- fused kernel --------------------------------


def _segnet_kernel(x_ref, mean_ref, istd_ref, mask_ref,
                   w1_ref, b1_ref, w2_ref, b2_ref,
                   o_ref, p2_ref, *, width):
    """Per-image fused SegNet forward, everything in channel-major (C, P) layout.

    x_ref   : (1, Cin, P)    image, pixels lane-dense (P = H*W)
    mean_ref: (Cin, 1)       per-channel mean
    istd_ref: (Cin, 1)       per-channel 1/std
    mask_ref: (9, P)         boundary masks for the 9 conv taps
    w1_ref  : (C1, 9*Cin)    conv1 weights, bf16, cols ordered (ky, kx, c)
    b1_ref  : (C1, 1)        conv1 bias, f32
    w2_ref  : (NCLS, 9*C1)   conv2 weights, bf16
    b2_ref  : (NCLS, 1)      conv2 bias, f32
    o_ref   : (1, NCLS, P)   softmax probabilities (lane-dense)
    p2_ref  : (9*C1, P)      VMEM scratch, bf16 im2col patches for conv2
    """
    cin = x_ref.shape[1]
    c1 = w1_ref.shape[0]

    def taps(a):
        # 9 shifted-and-masked views of a (C, P) activation; the lane rotation replaces the
        # padded spatial scratch, the mask zeroes contributions that would cross the image
        # border (i.e. implements SAME zero padding).
        outs = []
        for t in range(9):
            dy, dx = t // 3 - 1, t % 3 - 1
            off = dy * width + dx
            sh = a if off == 0 else jnp.roll(a, -off, axis=-1)
            outs.append(sh * mask_ref[t:t + 1, :])
        return outs

    # ---- normalize on lane-dense (Cin, P) vregs (VPU) ----
    xn = (x_ref[0] - mean_ref[...]) * istd_ref[...]

    # ---- encoder conv3x3 + ReLU: one MXU matmul, output (C1, P) fully lane-dense ----
    # Patches (9*Cin, P) are tiny (27 x 256 bf16) so they stay as an in-register value.
    p1 = jnp.concatenate(taps(xn), axis=0).astype(w1_ref.dtype)
    h1 = jnp.dot(w1_ref[...], p1, preferred_element_type=jnp.float32)
    h1 = jnp.maximum(h1 + b1_ref[...], 0.0)                            # (C1, P)

    # ---- decoder conv3x3: pack (9*C1, P) patches with full-row, 16-sublane-aligned
    #      (unmasked) stores, then one MXU matmul -> (NCLS, P) ----
    for t, tap in enumerate(taps(h1)):
        p2_ref[t * c1:(t + 1) * c1, :] = tap.astype(p2_ref.dtype)
    logits = jnp.dot(w2_ref[...], p2_ref[...], preferred_element_type=jnp.float32)
    logits = logits + b2_ref[...]                                      # (NCLS, P)

    # ---- softmax over channels: classes on sublanes, pixels on lanes; EXACT divide ----
    m = jnp.max(logits, axis=0, keepdims=True)
    e = jnp.exp(logits - m)
    s = jnp.sum(e, axis=0, keepdims=True)
    o_ref[0] = (e / s).astype(o_ref.dtype)


# ------------------------------- wrapper --------------------------------------


def segnet_forward(im_nchw, params):
    """im_nchw: (N, 3, H, W) like the PyTorch module; returns softmax probs (N, n_cls, H, W)."""
    n, cin, h, w = im_nchw.shape
    w1, b1 = params["w1"], params["b1"]            # (C1, 9*Cin) bf16, (C1, 1) f32
    w2, b2 = params["w2"], params["b2"]            # (NCLS, 9*C1) bf16, (NCLS, 1) f32
    c1, ncls = w1.shape[0], w2.shape[0]
    p = h * w

    # NCHW -> (N, C, H*W) is a pure reshape (channel-major already): pixels land on lanes.
    x = im_nchw.reshape(n, cin, p).astype(jnp.float32)
    mean = IM_MEAN.reshape(cin, 1)
    istd = (1.0 / IM_STD).reshape(cin, 1)
    mask = _boundary_masks(h, w)                   # (9, P)

    out = pl.pallas_call(
        functools.partial(_segnet_kernel, width=w),
        out_shape=jax.ShapeDtypeStruct((n, ncls, p), jnp.float32),
        grid=(n,),
        in_specs=[
            pl.BlockSpec((1, cin, p), lambda i: (i, 0, 0)),   # image (per batch element)
            pl.BlockSpec((cin, 1), lambda i: (0, 0)),          # mean
            pl.BlockSpec((cin, 1), lambda i: (0, 0)),          # 1/std
            pl.BlockSpec((9, p), lambda i: (0, 0)),            # tap boundary masks
            pl.BlockSpec((c1, 9 * cin), lambda i: (0, 0)),     # conv1 weights (bf16)
            pl.BlockSpec((c1, 1), lambda i: (0, 0)),           # conv1 bias
            pl.BlockSpec((ncls, 9 * c1), lambda i: (0, 0)),    # conv2 weights (bf16)
            pl.BlockSpec((ncls, 1), lambda i: (0, 0)),         # conv2 bias
        ],
        out_specs=pl.BlockSpec((1, ncls, p), lambda i: (i, 0, 0)),  # lane-dense output
        scratch_shapes=[pltpu.VMEM((9 * c1, p), jnp.bfloat16)],     # conv2 im2col patches
        compiler_params=pltpu.CompilerParams(
            dimension_semantics=("parallel",),          # both v7x TCs get one image each
            vmem_limit_bytes=32 * 1024 * 1024,          # <= physical VMEM on every gen
        ),
    )(x, mean, istd, mask, w1, b1, w2, b2)

    # (N, NCLS, H*W) -> (N, NCLS, H, W): pure reshape, no transpose.
    return out.reshape(n, ncls, h, w)


# ----------------------- parameters & pure-JAX references ----------------------


def init_params(key, cin=3, chid=16, nclass=8):
    k1, k2, k3, k4 = jax.random.split(key, 4)
    w1 = jax.random.normal(k1, (3, 3, cin, chid), jnp.float32) * 0.2     # HWIO, f32 master
    b1 = jax.random.normal(k2, (chid,), jnp.float32) * 0.1
    w2 = jax.random.normal(k3, (3, 3, chid, nclass), jnp.float32) * 0.2  # HWIO
    b2 = jax.random.normal(k4, (nclass,), jnp.float32) * 0.1
    return {
        # MXU-oriented (Cout, 9*Cin) bf16 weights; columns ordered (ky, kx, c) = tap-major.
        "w1": w1.reshape(9 * cin, chid).T.astype(jnp.bfloat16),
        "b1": b1.reshape(chid, 1),
        "w2": w2.reshape(9 * chid, nclass).T.astype(jnp.bfloat16),
        "b2": b2.reshape(nclass, 1),
        "w1_hwio": w1, "w2_hwio": w2,   # f32 HWIO masters for the independent conv reference
    }


def _taps_ref(a, mask, width):
    outs = []
    for t in range(9):
        dy, dx = t // 3 - 1, t % 3 - 1
        off = dy * width + dx
        sh = a if off == 0 else jnp.roll(a, -off, axis=-1)
        outs.append(sh * mask[t:t + 1, :])
    return jnp.concatenate(outs, axis=0)


def segnet_reference_matched(im_nchw, params):
    """Pure-JAX mirror at identical precision (bf16 operands, f32 accumulation): tight check
    of the Pallas kernel mechanics (specs, scratch, rotations, masks, layout)."""
    n, cin, hh, ww = im_nchw.shape
    p = hh * ww
    mean = IM_MEAN.reshape(cin, 1)
    istd = (1.0 / IM_STD).reshape(cin, 1)
    mask = _boundary_masks(hh, ww)
    x = im_nchw.reshape(n, cin, p).astype(jnp.float32)
    outs = []
    for i in range(n):
        xn = (x[i] - mean) * istd
        p1 = _taps_ref(xn, mask, ww).astype(jnp.bfloat16)
        h1 = jnp.maximum(
            jnp.dot(params["w1"], p1, preferred_element_type=jnp.float32) + params["b1"], 0.0)
        p2 = _taps_ref(h1, mask, ww).astype(jnp.bfloat16)
        lg = jnp.dot(params["w2"], p2, preferred_element_type=jnp.float32) + params["b2"]
        mx = jnp.max(lg, axis=0, keepdims=True)
        e = jnp.exp(lg - mx)
        outs.append(e / jnp.sum(e, axis=0, keepdims=True))
    return jnp.stack(outs).reshape(n, -1, hh, ww)


def segnet_reference_conv(im_nchw, params):
    """Independent lax.conv reference (validates SAME-conv / softmax semantics). Uses the same
    bf16 operand precision; the intermediate activation is re-quantized by a *different*
    formulation, so agreement is only to ~1e-3 (1 bf16 ulp on a handful of values)."""
    x = jnp.transpose(im_nchw, (0, 2, 3, 1)).astype(jnp.float32)         # NHWC
    xn = ((x - IM_MEAN) * (1.0 / IM_STD)).astype(jnp.bfloat16)
    dn = ("NHWC", "HWIO", "NHWC")
    h = lax.conv_general_dilated(
        xn, params["w1_hwio"].astype(jnp.bfloat16), (1, 1), "SAME",
        dimension_numbers=dn, preferred_element_type=jnp.float32) + params["b1"][:, 0]
    h = jnp.maximum(h, 0.0).astype(jnp.bfloat16)
    logits = lax.conv_general_dilated(
        h, params["w2_hwio"].astype(jnp.bfloat16), (1, 1), "SAME",
        dimension_numbers=dn, preferred_element_type=jnp.float32) + params["b2"][:, 0]
    prob = jax.nn.softmax(logits, axis=-1)
    return jnp.transpose(prob, (0, 3, 1, 2))


# ------------------------------------ main -------------------------------------

if __name__ == "__main__":
    key = jax.random.PRNGKey(0)
    k_im, k_par = jax.random.split(key)
    im = jax.random.uniform(k_im, (2, 3, 16, 16), jnp.float32)   # NCHW like PyTorch
    params = init_params(k_par)

    out = jax.block_until_ready(jax.jit(segnet_forward)(im, params))
    assert out.shape == (2, 8, 16, 16)

    # Tight check vs. an equal-precision pure-JAX mirror (same bf16 operands, f32 accum).
    ref_matched = segnet_reference_matched(im, params)
    np.testing.assert_allclose(np.asarray(out), np.asarray(ref_matched), atol=1e-4, rtol=1e-4)

    # Independent conv-based reference: tolerance covers only the 1-ulp bf16 re-quantization
    # of the hidden activation between the conv and im2col formulations.
    ref_conv = segnet_reference_conv(im, params)
    np.testing.assert_allclose(np.asarray(out), np.asarray(ref_conv), atol=1e-2, rtol=1e-2)

    # Softmax uses an exact divide now -> columns sum to 1 to f32 rounding.
    np.testing.assert_allclose(np.asarray(out.sum(axis=1)), 1.0, atol=1e-5)

    print("KERNEL_OK")
</pallas_src>

<mosaic_0001>
module attributes {stable_mosaic.version = 11 : i64} {
  func.func @_segnet_kernel(%arg0: i32, %arg1: memref<1x3x256xf32, #tpu.memory_space<vmem>>, %arg2: memref<3x1xf32, #tpu.memory_space<vmem>>, %arg3: memref<3x1xf32, #tpu.memory_space<vmem>>, %arg4: memref<9x256xf32, #tpu.memory_space<vmem>>, %arg5: memref<16x27xbf16, #tpu.memory_space<vmem>>, %arg6: memref<16x1xf32, #tpu.memory_space<vmem>>, %arg7: memref<8x144xbf16, #tpu.memory_space<vmem>>, %arg8: memref<8x1xf32, #tpu.memory_space<vmem>>, %arg9: memref<1x8x256xf32, #tpu.memory_space<vmem>>, %arg10: memref<144x256xbf16, #tpu.memory_space<vmem>>) attributes {dimension_semantics = [#tpu.dimension_semantics<parallel>], iteration_bounds = array<i64: 2>, scalar_prefetch = 0 : i64, scratch_operands = 1 : i64, tpu.core_type = #tpu.core_type<tc>, window_params = [{transform_indices = @transform_0, window_bounds = array<i64: 1, 3, 256>}, {pipeline_mode = #tpu.pipeline_mode<synchronous>, transform_indices = @transform_1, window_bounds = array<i64: 3, 1>}, {pipeline_mode = #tpu.pipeline_mode<synchronous>, transform_indices = @transform_2, window_bounds = array<i64: 3, 1>}, {pipeline_mode = #tpu.pipeline_mode<synchronous>, transform_indices = @transform_3, window_bounds = array<i64: 9, 256>}, {pipeline_mode = #tpu.pipeline_mode<synchronous>, transform_indices = @transform_4, window_bounds = array<i64: 16, 27>}, {pipeline_mode = #tpu.pipeline_mode<synchronous>, transform_indices = @transform_5, window_bounds = array<i64: 16, 1>}, {pipeline_mode = #tpu.pipeline_mode<synchronous>, transform_indices = @transform_6, window_bounds = array<i64: 8, 144>}, {pipeline_mode = #tpu.pipeline_mode<synchronous>, transform_indices = @transform_7, window_bounds = array<i64: 8, 1>}, {transform_indices = @transform_8, window_bounds = array<i64: 1, 8, 256>}]} {
    %c0 = arith.constant 0 : index
    %c0_0 = arith.constant 0 : index
    %c0_1 = arith.constant 0 : index
    %0 = vector.load %arg1[%c0, %c0_0, %c0_1] : memref<1x3x256xf32, #tpu.memory_space<vmem>>, vector<1x3x256xf32>
    %1 = vector.shape_cast %0 : vector<1x3x256xf32> to vector<3x256xf32>
    %c0_2 = arith.constant 0 : index
    %c0_3 = arith.constant 0 : index
    %2 = vector.load %arg2[%c0_2, %c0_3] : memref<3x1xf32, #tpu.memory_space<vmem>>, vector<3x1xf32>
    %3 = vector.broadcast %2 : vector<3x1xf32> to vector<3x256xf32>
    %4 = arith.subf %1, %3 : vector<3x256xf32>
    %c0_4 = arith.constant 0 : index
    %c0_5 = arith.constant 0 : index
    %5 = vector.load %arg3[%c0_4, %c0_5] : memref<3x1xf32, #tpu.memory_space<vmem>>, vector<3x1xf32>
    %6 = vector.broadcast %5 : vector<3x1xf32> to vector<3x256xf32>
    %7 = arith.mulf %4, %6 : vector<3x256xf32>
    %8 = vector.extract_strided_slice %7 {offsets = [0, 239], sizes = [3, 17], strides = [1, 1]} : vector<3x256xf32> to vector<3x17xf32>
    %9 = vector.extract_strided_slice %7 {offsets = [0, 0], sizes = [3, 239], strides = [1, 1]} : vector<3x256xf32> to vector<3x239xf32>
    %10 = tpu.concatenate %8, %9 in 1 : vector<3x17xf32>, vector<3x239xf32> -> vector<3x256xf32>
    %c0_6 = arith.constant 0 : index
    %c0_7 = arith.constant 0 : index
    %11 = vector.load %arg4[%c0_6, %c0_7] : memref<9x256xf32, #tpu.memory_space<vmem>>, vector<1x256xf32>
    %12 = vector.broadcast %11 : vector<1x256xf32> to vector<3x256xf32>
    %13 = arith.mulf %10, %12 : vector<3x256xf32>
    %14 = vector.extract_strided_slice %7 {offsets = [0, 240], sizes = [3, 16], strides = [1, 1]} : vector<3x256xf32> to vector<3x16xf32>
    %15 = vector.extract_strided_slice %7 {offsets = [0, 0], sizes = [3, 240], strides = [1, 1]} : vector<3x256xf32> to vector<3x240xf32>
    %16 = tpu.concatenate %14, %15 in 1 : vector<3x16xf32>, vector<3x240xf32> -> vector<3x256xf32>
    %c1 = arith.constant 1 : index
    %c0_8 = arith.constant 0 : index
    %17 = vector.load %arg4[%c1, %c0_8] : memref<9x256xf32, #tpu.memory_space<vmem>>, vector<1x256xf32>
    %18 = vector.broadcast %17 : vector<1x256xf32> to vector<3x256xf32>
    %19 = arith.mulf %16, %18 : vector<3x256xf32>
    %20 = vector.extract_strided_slice %7 {offsets = [0, 241], sizes = [3, 15], strides = [1, 1]} : vector<3x256xf32> to vector<3x15xf32>
    %21 = vector.extract_strided_slice %7 {offsets = [0, 0], sizes = [3, 241], strides = [1, 1]} : vector<3x256xf32> to vector<3x241xf32>
    %22 = tpu.concatenate %20, %21 in 1 : vector<3x15xf32>, vector<3x241xf32> -> vector<3x256xf32>
    %c2 = arith.constant 2 : index
    %c0_9 = arith.constant 0 : index
    %23 = vector.load %arg4[%c2, %c0_9] : memref<9x256xf32, #tpu.memory_space<vmem>>, vector<1x256xf32>
    %24 = vector.broadcast %23 : vector<1x256xf32> to vector<3x256xf32>
    %25 = arith.mulf %22, %24 : vector<3x256xf32>
    %26 = vector.extract_strided_slice %7 {offsets = [0, 255], sizes = [3, 1], strides = [1, 1]} : vector<3x256xf32> to vector<3x1xf32>
    %27 = vector.extract_strided_slice %7 {offsets = [0, 0], sizes = [3, 255], strides = [1, 1]} : vector<3x256xf32> to vector<3x255xf32>
    %28 = tpu.concatenate %26, %27 in 1 : vector<3x1xf32>, vector<3x255xf32> -> vector<3x256xf32>
    %c3 = arith.constant 3 : index
    %c0_10 = arith.constant 0 : index
    %29 = vector.load %arg4[%c3, %c0_10] : memref<9x256xf32, #tpu.memory_space<vmem>>, vector<1x256xf32>
    %30 = vector.broadcast %29 : vector<1x256xf32> to vector<3x256xf32>
    %31 = arith.mulf %28, %30 : vector<3x256xf32>
    %c4 = arith.constant 4 : index
    %c0_11 = arith.constant 0 : index
    %32 = vector.load %arg4[%c4, %c0_11] : memref<9x256xf32, #tpu.memory_space<vmem>>, vector<1x256xf32>
    %33 = vector.broadcast %32 : vector<1x256xf32> to vector<3x256xf32>
    %34 = arith.mulf %7, %33 : vector<3x256xf32>
    %35 = vector.extract_strided_slice %7 {offsets = [0, 1], sizes = [3, 255], strides = [1, 1]} : vector<3x256xf32> to vector<3x255xf32>
    %36 = vector.extract_strided_slice %7 {offsets = [0, 0], sizes = [3, 1], strides = [1, 1]} : vector<3x256xf32> to vector<3x1xf32>
    %37 = tpu.concatenate %35, %36 in 1 : vector<3x255xf32>, vector<3x1xf32> -> vector<3x256xf32>
    %c5 = arith.constant 5 : index
    %c0_12 = arith.constant 0 : index
    %38 = vector.load %arg4[%c5, %c0_12] : memref<9x256xf32, #tpu.memory_space<vmem>>, vector<1x256xf32>
    %39 = vector.broadcast %38 : vector<1x256xf32> to vector<3x256xf32>
    %40 = arith.mulf %37, %39 : vector<3x256xf32>
    %41 = vector.extract_strided_slice %7 {offsets = [0, 15], sizes = [3, 241], strides = [1, 1]} : vector<3x256xf32> to vector<3x241xf32>
    %42 = vector.extract_strided_slice %7 {offsets = [0, 0], sizes = [3, 15], strides = [1, 1]} : vector<3x256xf32> to vector<3x15xf32>
    %43 = tpu.concatenate %41, %42 in 1 : vector<3x241xf32>, vector<3x15xf32> -> vector<3x256xf32>
    %c6 = arith.constant 6 : index
    %c0_13 = arith.constant 0 : index
    %44 = vector.load %arg4[%c6, %c0_13] : memref<9x256xf32, #tpu.memory_space<vmem>>, vector<1x256xf32>
    %45 = vector.broadcast %44 : vector<1x256xf32> to vector<3x256xf32>
    %46 = arith.mulf %43, %45 : vector<3x256xf32>
    %47 = vector.extract_strided_slice %7 {offsets = [0, 16], sizes = [3, 240], strides = [1, 1]} : vector<3x256xf32> to vector<3x240xf32>
    %48 = vector.extract_strided_slice %7 {offsets = [0, 0], sizes = [3, 16], strides = [1, 1]} : vector<3x256xf32> to vector<3x16xf32>
    %49 = tpu.concatenate %47, %48 in 1 : vector<3x240xf32>, vector<3x16xf32> -> vector<3x256xf32>
    %c7 = arith.constant 7 : index
    %c0_14 = arith.constant 0 : index
    %50 = vector.load %arg4[%c7, %c0_14] : memref<9x256xf32, #tpu.memory_space<vmem>>, vector<1x256xf32>
    %51 = vector.broadcast %50 : vector<1x256xf32> to vector<3x256xf32>
    %52 = arith.mulf %49, %51 : vector<3x256xf32>
    %53 = vector.extract_strided_slice %7 {offsets = [0, 17], sizes = [3, 239], strides = [1, 1]} : vector<3x256xf32> to vector<3x239xf32>
    %54 = vector.extract_strided_slice %7 {offsets = [0, 0], sizes = [3, 17], strides = [1, 1]} : vector<3x256xf32> to vector<3x17xf32>
    %55 = tpu.concatenate %53, %54 in 1 : vector<3x239xf32>, vector<3x17xf32> -> vector<3x256xf32>
    %c8 = arith.constant 8 : index
    %c0_15 = arith.constant 0 : index
    %56 = vector.load %arg4[%c8, %c0_15] : memref<9x256xf32, #tpu.memory_space<vmem>>, vector<1x256xf32>
    %57 = vector.broadcast %56 : vector<1x256xf32> to vector<3x256xf32>
    %58 = arith.mulf %55, %57 : vector<3x256xf32>
    %59 = tpu.concatenate %13, %19, %25, %31, %34, %40, %46, %52, %58 in 0 : vector<3x256xf32>, vector<3x256xf32>, vector<3x256xf32>, vector<3x256xf32>, vector<3x256xf32>, vector<3x256xf32>, vector<3x256xf32>, vector<3x256xf32>, vector<3x256xf32> -> vector<27x256xf32>
    %60 = arith.truncf %59 : vector<27x256xf32> to vector<27x256xbf16>
    %c0_16 = arith.constant 0 : index
    %c0_17 = arith.constant 0 : index
    %61 = vector.load %arg5[%c0_16, %c0_17] : memref<16x27xbf16, #tpu.memory_space<vmem>>, vector<16x27xbf16>
    %cst = arith.constant dense<0.000000e+00> : vector<16x256xf32>
    %62 = tpu.matmul %61, %60, %cst {dimension_numbers = #tpu.dot_dimension_numbers<[1], [0], [0], [1], [0, 0, 1, 1], [], []>} : vector<16x27xbf16>, vector<27x256xbf16>, vector<16x256xf32> -> vector<16x256xf32>
    %c0_18 = arith.constant 0 : index
    %c0_19 = arith.constant 0 : index
    %63 = vector.load %arg6[%c0_18, %c0_19] : memref<16x1xf32, #tpu.memory_space<vmem>>, vector<16x1xf32>
    %64 = vector.broadcast %63 : vector<16x1xf32> to vector<16x256xf32>
    %65 = arith.addf %62, %64 : vector<16x256xf32>
    %cst_20 = arith.constant 0.000000e+00 : f32
    %66 = vector.broadcast %cst_20 : f32 to vector<16x256xf32>
    %67 = arith.maximumf %65, %66 : vector<16x256xf32>
    %68 = vector.extract_strided_slice %67 {offsets = [0, 239], sizes = [16, 17], strides = [1, 1]} : vector<16x256xf32> to vector<16x17xf32>
    %69 = vector.extract_strided_slice %67 {offsets = [0, 0], sizes = [16, 239], strides = [1, 1]} : vector<16x256xf32> to vector<16x239xf32>
    %70 = tpu.concatenate %68, %69 in 1 : vector<16x17xf32>, vector<16x239xf32> -> vector<16x256xf32>
    %c0_21 = arith.constant 0 : index
    %c0_22 = arith.constant 0 : index
    %71 = vector.load %arg4[%c0_21, %c0_22] : memref<9x256xf32, #tpu.memory_space<vmem>>, vector<1x256xf32>
    %72 = vector.broadcast %71 : vector<1x256xf32> to vector<16x256xf32>
    %73 = arith.mulf %70, %72 : vector<16x256xf32>
    %74 = vector.extract_strided_slice %67 {offsets = [0, 240], sizes = [16, 16], strides = [1, 1]} : vector<16x256xf32> to vector<16x16xf32>
    %75 = vector.extract_strided_slice %67 {offsets = [0, 0], sizes = [16, 240], strides = [1, 1]} : vector<16x256xf32> to vector<16x240xf32>
    %76 = tpu.concatenate %74, %75 in 1 : vector<16x16xf32>, vector<16x240xf32> -> vector<16x256xf32>
    %c1_23 = arith.constant 1 : index
    %c0_24 = arith.constant 0 : index
    %77 = vector.load %arg4[%c1_23, %c0_24] : memref<9x256xf32, #tpu.memory_space<vmem>>, vector<1x256xf32>
    %78 = vector.broadcast %77 : vector<1x256xf32> to vector<16x256xf32>
    %79 = arith.mulf %76, %78 : vector<16x256xf32>
    %80 = vector.extract_strided_slice %67 {offsets = [0, 241], sizes = [16, 15], strides = [1, 1]} : vector<16x256xf32> to vector<16x15xf32>
    %81 = vector.extract_strided_slice %67 {offsets = [0, 0], sizes = [16, 241], strides = [1, 1]} : vector<16x256xf32> to vector<16x241xf32>
    %82 = tpu.concatenate %80, %81 in 1 : vector<16x15xf32>, vector<16x241xf32> -> vector<16x256xf32>
    %c2_25 = arith.constant 2 : index
    %c0_26 = arith.constant 0 : index
    %83 = vector.load %arg4[%c2_25, %c0_26] : memref<9x256xf32, #tpu.memory_space<vmem>>, vector<1x256xf32>
    %84 = vector.broadcast %83 : vector<1x256xf32> to vector<16x256xf32>
    %85 = arith.mulf %82, %84 : vector<16x256xf32>
    %86 = vector.extract_strided_slice %67 {offsets = [0, 255], sizes = [16, 1], strides = [1, 1]} : vector<16x256xf32> to vector<16x1xf32>
    %87 = vector.extract_strided_slice %67 {offsets = [0, 0], sizes = [16, 255], strides = [1, 1]} : vector<16x256xf32> to vector<16x255xf32>
    %88 = tpu.concatenate %86, %87 in 1 : vector<16x1xf32>, vector<16x255xf32> -> vector<16x256xf32>
    %c3_27 = arith.constant 3 : index
    %c0_28 = arith.constant 0 : index
    %89 = vector.load %arg4[%c3_27, %c0_28] : memref<9x256xf32, #tpu.memory_space<vmem>>, vector<1x256xf32>
    %90 = vector.broadcast %89 : vector<1x256xf32> to vector<16x256xf32>
    %91 = arith.mulf %88, %90 : vector<16x256xf32>
    %c4_29 = arith.constant 4 : index
    %c0_30 = arith.constant 0 : index
    %92 = vector.load %arg4[%c4_29, %c0_30] : memref<9x256xf32, #tpu.memory_space<vmem>>, vector<1x256xf32>
    %93 = vector.broadcast %92 : vector<1x256xf32> to vector<16x256xf32>
    %94 = arith.mulf %67, %93 : vector<16x256xf32>
    %95 = vector.extract_strided_slice %67 {offsets = [0, 1], sizes = [16, 255], strides = [1, 1]} : vector<16x256xf32> to vector<16x255xf32>
    %96 = vector.extract_strided_slice %67 {offsets = [0, 0], sizes = [16, 1], strides = [1, 1]} : vector<16x256xf32> to vector<16x1xf32>
    %97 = tpu.concatenate %95, %96 in 1 : vector<16x255xf32>, vector<16x1xf32> -> vector<16x256xf32>
    %c5_31 = arith.constant 5 : index
    %c0_32 = arith.constant 0 : index
    %98 = vector.load %arg4[%c5_31, %c0_32] : memref<9x256xf32, #tpu.memory_space<vmem>>, vector<1x256xf32>
    %99 = vector.broadcast %98 : vector<1x256xf32> to vector<16x256xf32>
    %100 = arith.mulf %97, %99 : vector<16x256xf32>
    %101 = vector.extract_strided_slice %67 {offsets = [0, 15], sizes = [16, 241], strides = [1, 1]} : vector<16x256xf32> to vector<16x241xf32>
    %102 = vector.extract_strided_slice %67 {offsets = [0, 0], sizes = [16, 15], strides = [1, 1]} : vector<16x256xf32> to vector<16x15xf32>
    %103 = tpu.concatenate %101, %102 in 1 : vector<16x241xf32>, vector<16x15xf32> -> vector<16x256xf32>
    %c6_33 = arith.constant 6 : index
    %c0_34 = arith.constant 0 : index
    %104 = vector.load %arg4[%c6_33, %c0_34] : memref<9x256xf32, #tpu.memory_space<vmem>>, vector<1x256xf32>
    %105 = vector.broadcast %104 : vector<1x256xf32> to vector<16x256xf32>
    %106 = arith.mulf %103, %105 : vector<16x256xf32>
    %107 = vector.extract_strided_slice %67 {offsets = [0, 16], sizes = [16, 240], strides = [1, 1]} : vector<16x256xf32> to vector<16x240xf32>
    %108 = vector.extract_strided_slice %67 {offsets = [0, 0], sizes = [16, 16], strides = [1, 1]} : vector<16x256xf32> to vector<16x16xf32>
    %109 = tpu.concatenate %107, %108 in 1 : vector<16x240xf32>, vector<16x16xf32> -> vector<16x256xf32>
    %c7_35 = arith.constant 7 : index
    %c0_36 = arith.constant 0 : index
    %110 = vector.load %arg4[%c7_35, %c0_36] : memref<9x256xf32, #tpu.memory_space<vmem>>, vector<1x256xf32>
    %111 = vector.broadcast %110 : vector<1x256xf32> to vector<16x256xf32>
    %112 = arith.mulf %109, %111 : vector<16x256xf32>
    %113 = vector.extract_strided_slice %67 {offsets = [0, 17], sizes = [16, 239], strides = [1, 1]} : vector<16x256xf32> to vector<16x239xf32>
    %114 = vector.extract_strided_slice %67 {offsets = [0, 0], sizes = [16, 17], strides = [1, 1]} : vector<16x256xf32> to vector<16x17xf32>
    %115 = tpu.concatenate %113, %114 in 1 : vector<16x239xf32>, vector<16x17xf32> -> vector<16x256xf32>
    %c8_37 = arith.constant 8 : index
    %c0_38 = arith.constant 0 : index
    %116 = vector.load %arg4[%c8_37, %c0_38] : memref<9x256xf32, #tpu.memory_space<vmem>>, vector<1x256xf32>
    %117 = vector.broadcast %116 : vector<1x256xf32> to vector<16x256xf32>
    %118 = arith.mulf %115, %117 : vector<16x256xf32>
    %119 = arith.truncf %73 : vector<16x256xf32> to vector<16x256xbf16>
    %c0_39 = arith.constant 0 : index
    %c0_40 = arith.constant 0 : index
    %120 = vector.load %arg10[%c0_39, %c0_40] : memref<144x256xbf16, #tpu.memory_space<vmem>>, vector<16x256xbf16>
    tpu.vector_store %arg10[%c0_39, %c0_40], %119 {strides = array<i32>} : memref<144x256xbf16, #tpu.memory_space<vmem>>, vector<16x256xbf16>,
    %121 = arith.truncf %79 : vector<16x256xf32> to vector<16x256xbf16>
    %c16 = arith.constant 16 : index
    %c0_41 = arith.constant 0 : index
    %122 = vector.load %arg10[%c16, %c0_41] : memref<144x256xbf16, #tpu.memory_space<vmem>>, vector<16x256xbf16>
    tpu.vector_store %arg10[%c16, %c0_41], %121 {strides = array<i32>} : memref<144x256xbf16, #tpu.memory_space<vmem>>, vector<16x256xbf16>,
    %123 = arith.truncf %85 : vector<16x256xf32> to vector<16x256xbf16>
    %c32 = arith.constant 32 : index
    %c0_42 = arith.constant 0 : index
    %124 = vector.load %arg10[%c32, %c0_42] : memref<144x256xbf16, #tpu.memory_space<vmem>>, vector<16x256xbf16>
    tpu.vector_store %arg10[%c32, %c0_42], %123 {strides = array<i32>} : memref<144x256xbf16, #tpu.memory_space<vmem>>, vector<16x256xbf16>,
    %125 = arith.truncf %91 : vector<16x256xf32> to vector<16x256xbf16>
    %c48 = arith.constant 48 : index
    %c0_43 = arith.constant 0 : index
    %126 = vector.load %arg10[%c48, %c0_43] : memref<144x256xbf16, #tpu.memory_space<vmem>>, vector<16x256xbf16>
    tpu.vector_store %arg10[%c48, %c0_43], %125 {strides = array<i32>} : memref<144x256xbf16, #tpu.memory_space<vmem>>, vector<16x256xbf16>,
    %127 = arith.truncf %94 : vector<16x256xf32> to vector<16x256xbf16>
    %c64 = arith.constant 64 : index
    %c0_44 = arith.constant 0 : index
    %128 = vector.load %arg10[%c64, %c0_44] : memref<144x256xbf16, #tpu.memory_space<vmem>>, vector<16x256xbf16>
    tpu.vector_store %arg10[%c64, %c0_44], %127 {strides = array<i32>} : memref<144x256xbf16, #tpu.memory_space<vmem>>, vector<16x256xbf16>,
    %129 = arith.truncf %100 : vector<16x256xf32> to vector<16x256xbf16>
    %c80 = arith.constant 80 : index
    %c0_45 = arith.constant 0 : index
    %130 = vector.load %arg10[%c80, %c0_45] : memref<144x256xbf16, #tpu.memory_space<vmem>>, vector<16x256xbf16>
    tpu.vector_store %arg10[%c80, %c0_45], %129 {strides = array<i32>} : memref<144x256xbf16, #tpu.memory_space<vmem>>, vector<16x256xbf16>,
    %131 = arith.truncf %106 : vector<16x256xf32> to vector<16x256xbf16>
    %c96 = arith.constant 96 : index
    %c0_46 = arith.constant 0 : index
    %132 = vector.load %arg10[%c96, %c0_46] : memref<144x256xbf16, #tpu.memory_space<vmem>>, vector<16x256xbf16>
    tpu.vector_store %arg10[%c96, %c0_46], %131 {strides = array<i32>} : memref<144x256xbf16, #tpu.memory_space<vmem>>, vector<16x256xbf16>,
    %133 = arith.truncf %112 : vector<16x256xf32> to vector<16x256xbf16>
    %c112 = arith.constant 112 : index
    %c0_47 = arith.constant 0 : index
    %134 = vector.load %arg10[%c112, %c0_47] : memref<144x256xbf16, #tpu.memory_space<vmem>>, vector<16x256xbf16>
    tpu.vector_store %arg10[%c112, %c0_47], %133 {strides = array<i32>} : memref<144x256xbf16, #tpu.memory_space<vmem>>, vector<16x256xbf16>,
    %135 = arith.truncf %118 : vector<16x256xf32> to vector<16x256xbf16>
    %c128 = arith.constant 128 : index
    %c0_48 = arith.constant 0 : index
    %136 = vector.load %arg10[%c128, %c0_48] : memref<144x256xbf16, #tpu.memory_space<vmem>>, vector<16x256xbf16>
    tpu.vector_store %arg10[%c128, %c0_48], %135 {strides = array<i32>} : memref<144x256xbf16, #tpu.memory_space<vmem>>, vector<16x256xbf16>,
    %c0_49 = arith.constant 0 : index
    %c0_50 = arith.constant 0 : index
    %137 = vector.load %arg7[%c0_49, %c0_50] : memref<8x144xbf16, #tpu.memory_space<vmem>>, vector<8x144xbf16>
    %c0_51 = arith.constant 0 : index
    %c0_52 = arith.constant 0 : index
    %138 = vector.load %arg10[%c0_51, %c0_52] : memref<144x256xbf16, #tpu.memory_space<vmem>>, vector<144x256xbf16>
    %cst_53 = arith.constant dense<0.000000e+00> : vector<8x256xf32>
    %139 = tpu.matmul %137, %138, %cst_53 {dimension_numbers = #tpu.dot_dimension_numbers<[1], [0], [0], [1], [0, 0, 1, 1], [], []>} : vector<8x144xbf16>, vector<144x256xbf16>, vector<8x256xf32> -> vector<8x256xf32>
    %c0_54 = arith.constant 0 : index
    %c0_55 = arith.constant 0 : index
    %140 = vector.load %arg8[%c0_54, %c0_55] : memref<8x1xf32, #tpu.memory_space<vmem>>, vector<8x1xf32>
    %141 = vector.broadcast %140 : vector<8x1xf32> to vector<8x256xf32>
    %142 = arith.addf %139, %141 : vector<8x256xf32>
    %cst_56 = arith.constant dense<0xFF800000> : vector<256xf32>
    %143 = vector.multi_reduction <maximumf>, %142, %cst_56 [0] : vector<8x256xf32> to vector<256xf32>
    %144 = vector.shape_cast %143 : vector<256xf32> to vector<1x256xf32>
    %145 = vector.broadcast %144 : vector<1x256xf32> to vector<8x256xf32>
    %146 = arith.subf %142, %145 : vector<8x256xf32>
    %147 = math.exp %146 : vector<8x256xf32>
    %cst_57 = arith.constant dense<0.000000e+00> : vector<256xf32>
    %148 = vector.multi_reduction <add>, %147, %cst_57 [0] : vector<8x256xf32> to vector<256xf32>
    %149 = vector.shape_cast %148 : vector<256xf32> to vector<1x256xf32>
    %150 = vector.broadcast %149 : vector<1x256xf32> to vector<8x256xf32>
    %151 = arith.divf %147, %150 : vector<8x256xf32>
    %c0_58 = arith.constant 0 : index
    %c0_59 = arith.constant 0 : index
    %c0_60 = arith.constant 0 : index
    %152 = vector.load %arg9[%c0_58, %c0_59, %c0_60] : memref<1x8x256xf32, #tpu.memory_space<vmem>>, vector<1x8x256xf32>
    %153 = vector.shape_cast %152 : vector<1x8x256xf32> to vector<8x256xf32>
    %154 = vector.shape_cast %151 : vector<8x256xf32> to vector<1x8x256xf32>
    tpu.vector_store %arg9[%c0_58, %c0_59, %c0_60], %154 {strides = array<i32>} : memref<1x8x256xf32, #tpu.memory_space<vmem>>, vector<1x8x256xf32>,
    return
  }
  func.func @transform_0(%arg0: i32) -> (i32, i32, i32) {
    %c0_i32 = arith.constant 0 : i32
    %c0_i32_0 = arith.constant 0 : i32
    %c0_i32_1 = arith.constant 0 : i32
    return %arg0, %c0_i32, %c0_i32_0 : i32, i32, i32
  }
  func.func @transform_1(%arg0: i32) -> (i32, i32) {
    %c0_i32 = arith.constant 0 : i32
    %c0_i32_0 = arith.constant 0 : i32
    %c0_i32_1 = arith.constant 0 : i32
    return %c0_i32, %c0_i32_0 : i32, i32
  }
  func.func @transform_2(%arg0: i32) -> (i32, i32) {
    %c0_i32 = arith.constant 0 : i32
    %c0_i32_0 = arith.constant 0 : i32
    %c0_i32_1 = arith.constant 0 : i32
    return %c0_i32, %c0_i32_0 : i32, i32
  }
  func.func @transform_3(%arg0: i32) -> (i32, i32) {
    %c0_i32 = arith.constant 0 : i32
    %c0_i32_0 = arith.constant 0 : i32
    %c0_i32_1 = arith.constant 0 : i32
    return %c0_i32, %c0_i32_0 : i32, i32
  }
  func.func @transform_4(%arg0: i32) -> (i32, i32) {
    %c0_i32 = arith.constant 0 : i32
    %c0_i32_0 = arith.constant 0 : i32
    %c0_i32_1 = arith.constant 0 : i32
    return %c0_i32, %c0_i32_0 : i32, i32
  }
  func.func @transform_5(%arg0: i32) -> (i32, i32) {
    %c0_i32 = arith.constant 0 : i32
    %c0_i32_0 = arith.constant 0 : i32
    %c0_i32_1 = arith.constant 0 : i32
    return %c0_i32, %c0_i32_0 : i32, i32
  }
  func.func @transform_6(%arg0: i32) -> (i32, i32) {
    %c0_i32 = arith.constant 0 : i32
    %c0_i32_0 = arith.constant 0 : i32
    %c0_i32_1 = arith.constant 0 : i32
    return %c0_i32, %c0_i32_0 : i32, i32
  }
  func.func @transform_7(%arg0: i32) -> (i32, i32) {
    %c0_i32 = arith.constant 0 : i32
    %c0_i32_0 = arith.constant 0 : i32
    %c0_i32_1 = arith.constant 0 : i32
    return %c0_i32, %c0_i32_0 : i32, i32
  }
  func.func @transform_8(%arg0: i32) -> (i32, i32, i32) {
    %c0_i32 = arith.constant 0 : i32
    %c0_i32_0 = arith.constant 0 : i32
    %c0_i32_1 = arith.constant 0 : i32
    return %arg0, %c0_i32, %c0_i32_0 : i32, i32, i32
  }
}

</mosaic_0001>

<bundles_post_ra>
// kernel: segnet_forward.1
= control target key start
LH: loop header
LB: loop body
LE: loop exit
PB: predicated region body
PF: predicated region fallthrough
CT: control target
= control target key end

     0   :  { %s1203_s27 = smov 0   ;;  %s1562_s0 = inlined_call_operand.vmem [shape: f32[2,3,256], index: 0, kind: input, shape index: {}]   ;;  %s1563_s1 = inlined_call_operand.vmem [shape: f32[3,1], index: 1, kind: input, shape index: {}]   ;;  %s1564_s2 = inlined_call_operand.vmem [shape: f32[3,1], index: 2, kind: input, shape index: {}]   ;;  %s1565_s3 = inlined_call_operand.vmem [shape: f32[9,256], index: 3, kind: input, shape index: {}]   ;;  %s1566_s4 = inlined_call_operand.vmem [shape: bf16[16,27], index: 4, kind: input, shape index: {}]   ;;  %s1567_s5 = inlined_call_operand.vmem [shape: f32[16,1], index: 5, kind: input, shape index: {}]   ;;  %s1568_s6 = inlined_call_operand.vmem [shape: bf16[8,144], index: 6, kind: input, shape index: {}]   ;;  %s1569_s7 = inlined_call_operand.vmem [shape: f32[8,1], index: 7, kind: input, shape index: {}]   ;;  %s1570_s8 = inlined_call_operand.vmem [shape: f32[2,8,256], index: 8, kind: output, shape index: {}]  }
   0x1 LB: > { %s1081_s28 = sadd.s32 4294967295, %s1145_s27   ;;  %p1085_p0 = scmp.ge.s32.totalorder %s1145_s27, 1  ;;  %s1145_s27 = sphi %s1203_s27, %s18_s27  }
   0x2   : > { %p262_p1 = scmp.lt.s32.totalorder %s1145_s27, 3 }
   0x4   : > { %p263_p2 = pnand %p1085_p0, %p262_p1 }
   0x5   : > { %v308_v0 = vld [vmem:[%s1563_s1] sm:$0x7] (!%p263_p2)  ;;  %v1147_v1 = vmov (!%p263_p2), 0   ;;  %p296_p3 = scmp.lt.s32.totalorder (!%p263_p2), %s1081_s28, 1  ;;  %v1148_v3 = vmov (!%p263_p2), 839922192   ;;  %v316_v5 = vlaneseq (!%p263_p2) }
   0x6   : > { %266 = sbr.rel (%p263_p2) target bundleno = 970 (0x3ca), region = 52  ;;  %1126 = vset.pattern.permute.xlu0 (!%p263_p2), %v1147_v1  ;;  %678 = vmatprep.mubr.bf16.mxu0 (!%p263_p2), %v1147_v1  ;;  %v322_v2 = vld [vmem:[%s1564_s2] sm:$0x7] (!%p263_p2)  ;;  %v314_v4 = vunpack.c.l.s4 (!%p263_p2), %v1148_v3  ;;  %s1149_s15 = smov (!%p263_p2), 127   ;;  %v618_v18 = vld [vmem:[%s1567_s5 + $0x8] sm:$0xff] (!%p263_p2)  ;;  %vm417_vm0 = vcmask (!%p263_p2), 7168  }
   0x7   : > { %311 = vperm.xlu0 (!%p263_p2), %1126, %v308_v0   ;;  %1127 = vset.pattern.permute.xlu1 (!%p263_p2), %v1147_v1  ;;  %v317_v7 = vshrl.u32 (!%p263_p2), %v316_v5, 7  ;;  %s1150_s16 = smov (!%p263_p2), 15   ;;  %s1151_s17 = smov (!%p263_p2), 113   ;;  %v617_v17 = vld [vmem:[%s1567_s5] sm:$0xff] (!%p263_p2)  ;;  %vm367_vm1 = vcmask (!%p263_p2), 130048   ;;  %vm392_vm2 = vcmask (!%p263_p2), 121856  }
   0x8   : > { %v315_v6 = vunpack.c.0.s8 (!%p263_p2), %v314_v4  ;;  %s1152_s18 = smov (!%p263_p2), 1   ;;  %s1153_s19 = smov (!%p263_p2), 112   ;;  %v1093_v21 = vld [vmem:[%s1565_s3 + $0x4] ss:$8 sm:$0x3] (!%p263_p2)  ;;  %vm343_vm3 = vcmask (!%p263_p2), 138240  }
   0x9   : > { %s1154_s20 = smov (!%p263_p2), 16   ;;  %s1155_s21 = smov (!%p263_p2), 17   ;;  %v1245_v19 = vsub.s32 (!%p263_p2), 0, %v317_v7  ;;  %v1247_v20 = vsub.s32 (!%p263_p2), 1, %v317_v7  ;;  %vm455_vm4 = vcmask (!%p263_p2), 1039360   ;;  %vm596_vm5 = vcmask (!%p263_p2), 1040384  }
   0xa   : > { %v318_v8 = vsub.s32 (!%p263_p2), %v315_v6, %v317_v7  ;;  %s1156_s22 = smov (!%p263_p2), 111   ;;  %v1092_v29 = vld [vmem:[%s1565_s3 + $0x3] ss:$8 sm:$0x3] (!%p263_p2)  ;;  %vm480_vm6 = vcmask (!%p263_p2), 924672   ;;  %vm590_vm7 = vcmask (!%p263_p2), 1042432  }
   0xb   : > { %325 = vperm.xlu0 (!%p263_p2), %1126, %v322_v2   ;;  %v1255_v24 = vrot.slane (!%p263_p2), %v1093_v21, %v1245_v19  ;;  %v1258_v25 = vrot.slane (!%p263_p2), %v1093_v21, %v1247_v20  ;;  %v1090_v32 = vld [vmem:[%s1565_s3 + $0x1] ss:$8 sm:$0x3] (!%p263_p2)  ;;  %v1091_v34 = vld [vmem:[%s1565_s3 + $0x2] ss:$8 sm:$0x3] (!%p263_p2)  ;;  %v1278_v35 = vrot.slane (!%p263_p2), %v1092_v29, %v1245_v19  ;;  %v1281_v36 = vrot.slane (!%p263_p2), %v1092_v29, %v1247_v20 }
   0xc   : > { %v348_v37 = vld [vmem:[%s1565_s3] ss:$8 sm:$0x3] (!%p263_p2)  ;;  %v1287_v38 = vrot.slane (!%p263_p2), %v1090_v32, %v1245_v19  ;;  %v1290_v39 = vrot.slane (!%p263_p2), %v1090_v32, %v1247_v20  ;;  %v1094_v40 = vld [vmem:[%s1565_s3 + $0x5] ss:$8 sm:$0x3] (!%p263_p2)  ;;  %v1296_v43 = vrot.slane (!%p263_p2), %v1091_v34, %v1245_v19  ;;  %v1299_v44 = vrot.slane (!%p263_p2), %v1091_v34, %v1247_v20 }
   0xd   : > { %s1572_s28 = smov (!%p296_p3, %s1081_s28), 1  ;;  %v448_v28 = vcombine.low %v1255_v24, %v1258_v25  ;;  %v1306_v48 = vrot.slane %v348_v37, %v1245_v19  ;;  %v1309_v49 = vrot.slane %v348_v37, %v1247_v20  ;;  %v1095_v50 = vld [vmem:[%s1565_s3 + $0x6] ss:$8 sm:$0x3]  ;;  %v1315_v51 = vrot.slane %v1094_v40, %v1245_v19 }
   0xe   : > { %s1105_s11 = sshll.u32 %s1572_s28, 3  ;;  %v1318_v52 = vrot.slane %v1094_v40, %v1247_v20  ;;  %vm599_vm8 = vcmask 1043456   ;;  %v1323_v57 = vrot.slane %v1095_v50, %v1245_v19  ;;  %v1326_v58 = vrot.slane %v1095_v50, %v1247_v20  ;;  %v1096_v59 = vld [vmem:[%s1565_s3 + $0x7] ss:$8 sm:$0x3] }
   0xf   : > { %s300_s14 = scalar_lea.vmem %s1562_s0, %s1105_s11  ;;  %vm593_vm9 = vcmask 1045504   ;;  %vm602_vm10 = vcmask 1046528   ;;  %vm505_vm11 = vcmask 916480   ;;  %v1340_v5 = vrot.slane %v1096_v59, %v1245_v19 }
  0x10   : > { %v307_v11 = vld [vmem:[%s300_s14] sm:$0x77]  ;;  %vm605_vm12 = vcmask 1041408   ;;  %vm530_vm13 = vcmask 908288   ;;  %vm608_vm14 = vcmask 1044480   ;;  %vm634_vm15 = vcmask 220160  }
  0x86   : > { %v312_v9 = vpop.permute.xlu0 %311 }
  0x87   : > { %v319_v10 = vrot.slane %v312_v9, %v318_v8 }
  0x89   : > { %v321_v13 = vsub.f32 %v307_v11, %v319_v10 }
  0x8a   : > { %v326_v12 = vpop.permute.xlu0 %325 }
  0x8b   : > { %v333_v14 = vrot.slane %v326_v12, %v318_v8 }
  0x8d   : > { %v335_v15 = vmul.f32 %v333_v14, %v321_v13 }
  0x8f   : > { %451 = vrot.lane.b32.xlu0 %v335_v15, %s1149_s15  ;;  %390 = vrot.lane.b32.xlu1 %v335_v15, %s1150_s16  ;;  %v337_v16 = vcombine.high %v335_v15, %v335_v15  ;;  %v1272_v33 = vmul.f32 %v448_v28, %v335_v15 }
  0x91   : > { %v570_v45 = vcombine.low %v1272_v33, %v1272_v33 }
  0x93   : > { %476 = vrot.lane.b32.xlu0 %v335_v15, %s1151_s17  ;;  %415 = vrot.lane.b32.xlu1 %v335_v15, %s1152_s18 }
  0x97   : > { %501 = vrot.lane.b32.xlu0 %v335_v15, %s1153_s19  ;;  %365 = vrot.lane.b32.xlu1 %v335_v15, %s1154_s20 }
  0x9b   : > { %341 = vrot.lane.b32.xlu1 %v335_v15, %s1155_s21  ;;  %412 = vrot.lane.b32.xlu0 %v337_v16, %s1152_s18 }
  0x9f   : > { %362 = vrot.lane.b32.xlu0 %v337_v16, %s1154_s20  ;;  %387 = vrot.lane.b32.xlu1 %v337_v16, %s1150_s16 }
  0xa3   : > { %338 = vrot.lane.b32.xlu0 %v337_v16, %s1155_s21  ;;  %453 = vrot.lane.b32.xlu1 %v337_v16, %s1149_s15 }
  0xa7   : > { %526 = vrot.lane.b32.xlu0 %v335_v15, %s1156_s22  ;;  %478 = vrot.lane.b32.xlu1 %v337_v16, %s1151_s17 }
  0xab   : > { %621 = vperm.xlu0 %1126, %v617_v17   ;;  %503 = vrot.lane.b32.xlu1 %v337_v16, %s1153_s19 }
  0xaf   : > { %528 = vrot.lane.b32.xlu1 %v337_v16, %s1156_s22 }
  0xb3   : > { %626 = vperm.xlu1 %1127, %v618_v18  }
 0x101   : > { %v1252_v22 = vpop.permute.xlu0 %451  ;;  %v391_v23 = vpop.permute.xlu1 %390 }
 0x105   : > { %v1260_v26 = vpop.permute.xlu0 %476  ;;  %v416_v27 = vpop.permute.xlu1 %415 }
 0x109   : > { %v1267_v30 = vpop.permute.xlu0 %501  ;;  %v366_v31 = vpop.permute.xlu1 %365 }
 0x10d   : > { %v342_v41 = vpop.permute.xlu1 %341  ;;  %v413_v42 = vpop.permute.xlu0 %412 }
 0x10e   : > { %v418_v46 = vsel %vm417_vm0, %v416_v27, %v413_v42  ;;  %v421_v47 = vsel %vm417_vm0, %v413_v42, %v416_v27  ;;  %v1353_v27 = vrot.slane %v1096_v59, %v1247_v20 }
 0x10f   : > { %v435_v53 = vmul.f32 %v1278_v35, %v421_v47  ;;  %v436_v54 = vmul.f32 %v1281_v36, %v418_v46 }
 0x111   : > { %v363_v55 = vpop.permute.xlu0 %362  ;;  %v388_v56 = vpop.permute.xlu1 %387  ;;  %v565_v3 = vrot.slane %v435_v53, 7  ;;  %v566_v6 = vrot.slane %v436_v54, 7 }
 0x112   : > { %v368_v60 = vsel %vm367_vm1, %v366_v31, %v363_v55  ;;  %v371_v61 = vsel %vm367_vm1, %v363_v55, %v366_v31  ;;  %v393_v62 = vsel %vm392_vm2, %v391_v23, %v388_v56  ;;  %v396_v63 = vsel %vm392_vm2, %v388_v56, %v391_v23 }
 0x113   : > { %v386_v0 = vmul.f32 %v1290_v39, %v368_v60  ;;  %v410_v1 = vmul.f32 %v1296_v43, %v396_v63  ;;  %v411_v2 = vmul.f32 %v1299_v44, %v393_v62  ;;  %v385_v4 = vmul.f32 %v1287_v38, %v371_v61 }
 0x115   : > { %v554_v7 = vrot.slane %v386_v0, 5  ;;  %v559_v8 = vrot.slane %v410_v1, 2  ;;  %v560_v9 = vrot.slane %v411_v2, 2  ;;  %v339_v10 = vpop.permute.xlu0 %338  ;;  %v454_v11 = vpop.permute.xlu1 %453  ;;  %v553_v23 = vrot.slane %v385_v4, 5 }
 0x116   : > { %v344_v12 = vsel %vm343_vm3, %v342_v41, %v339_v10  ;;  %v347_v13 = vsel %vm343_vm3, %v339_v10, %v342_v41  ;;  %v456_v14 = vsel %vm455_vm4, %v1252_v22, %v454_v11  ;;  %v460_v15 = vsel %vm455_vm4, %v454_v11, %v1252_v22 }
 0x117   : > { %v360_v16 = vmul.f32 %v1306_v48, %v347_v13  ;;  %v361_v17 = vmul.f32 %v1309_v49, %v344_v12  ;;  %v474_v18 = vmul.f32 %v1315_v51, %v456_v14  ;;  %v475_v21 = vmul.f32 %v1318_v52, %v460_v15 }
 0x118   : > { %v598_v28 = vsel %vm596_vm5, %v560_v9, %v566_v6  ;;  %v597_v29 = vsel %vm596_vm5, %v559_v8, %v565_v3 }
 0x119   : > { %v574_v31 = vrot.slane %v474_v18, 1  ;;  %v575_v32 = vrot.slane %v475_v21, 1  ;;  %v479_v34 = vpop.permute.xlu1 %478  ;;  %v592_v22 = vsel %vm590_vm7, %v361_v17, %v554_v7  ;;  %v601_v37 = vsel %vm599_vm8, %v598_v28, %v1272_v33  ;;  %v527_v4 = vpop.permute.xlu0 %526  ;;  %v1128_v28 = vld [vmem:[%s1566_s4] sm:$0xff]  }
 0x11a   : > { %v481_v40 = vsel %vm480_vm6, %v1260_v26, %v479_v34  ;;  %v485_v41 = vsel %vm480_vm6, %v479_v34, %v1260_v26  ;;  %v595_v42 = vsel %vm593_vm9, %v592_v22, %v560_v9  ;;  %v591_v46 = vsel %vm590_vm7, %v360_v16, %v553_v23  ;;  %v1097_v26 = vld [vmem:[%s1565_s3 + $0x10] ss:$8 sm:$0x3] }
 0x11b   : > { %v499_v47 = vmul.f32 %v1323_v57, %v481_v40  ;;  %v500_v50 = vmul.f32 %v1326_v58, %v485_v41  ;;  %v604_v53 = vsel %vm602_vm10, %v601_v37, %v575_v32  ;;  %v594_v54 = vsel %vm593_vm9, %v591_v46, %v559_v8 }
 0x11c   : > { %v612_v55 = vpack.c.bf16 %v604_v53, %v595_v42  ;;  %v600_v56 = vsel %vm599_vm8, %v597_v29, %v570_v45  ;;  %v1385_v2 = vrot.slane %v1097_v26, %v1245_v19  ;;  %v1388_v3 = vrot.slane %v1097_v26, %v1247_v20 }
 0x11d   : > { %v580_v59 = vrot.slane %v499_v47, 6  ;;  %v504_v60 = vpop.permute.xlu1 %503  ;;  %v603_v61 = vsel %vm602_vm10, %v600_v56, %v574_v31  ;;  %v581_v62 = vrot.slane %v500_v50, 6  ;;  %v1157_v9 = vmov 65535  }
 0x11e   : > { %v506_v63 = vsel %vm505_vm11, %v1267_v30, %v504_v60  ;;  %v510_v0 = vsel %vm505_vm11, %v504_v60, %v1267_v30  ;;  %646 = vmatprep.subr.bf16.mxu0 %v612_v55  ;;  %v611_v33 = vpack.c.bf16 %v603_v61, %v594_v54  ;;  %v638_v30 = vsel %vm608_vm14, 4294967295, %v1157_v9 }
 0x11f   : > { %v524_v45 = vmul.f32 %v1340_v5, %v506_v63  ;;  %v525_v1 = vmul.f32 %v1353_v27, %v510_v0  ;;  %v606_v10 = vsel %vm605_vm12, %v574_v31, %v580_v59  ;;  %v607_v11 = vsel %vm605_vm12, %v575_v32, %v581_v62  ;;  %v934_v62 = vld [vmem:[%s1569_s7] sm:$0xff] }
 0x120   : > { %647 = vmatpush1.bf16.msra.mxu0 %v611_v33  ;;  %v639_v16 = vsel %vm593_vm9, %v638_v30, 0 }
 0x121   : > { %v586_v6 = vrot.slane %v524_v45, 3  ;;  %v587_v7 = vrot.slane %v525_v1, 3  ;;  %v529_v8 = vpop.permute.xlu1 %528 }
 0x122   : > { %v531_v12 = vsel %vm530_vm13, %v527_v4, %v529_v8  ;;  %v535_v19 = vsel %vm530_vm13, %v529_v8, %v527_v4 }
 0x123   : > { %v609_v13 = vsel %vm608_vm14, %v606_v10, %v586_v6  ;;  %v610_v14 = vsel %vm608_vm14, %v607_v11, %v587_v7  ;;  %v549_v20 = vmul.f32 %v1385_v2, %v531_v12  ;;  %v550_v15 = vmul.f32 %v1388_v3, %v535_v19 }
 0x125   : > { %v613_v17 = vpack.c.bf16 %v549_v20, %v609_v13  ;;  %v614_v18 = vpack.c.bf16 %v550_v15, %v610_v14 }
 0x127   : > { %v644_v21 = vand.u32 %v639_v16, %v614_v18  ;;  %v641_v23 = vand.u32 %v639_v16, %v613_v17 }
 0x129   : > { %648 = vmatprep.subr.bf16.mxu0 %v644_v21 }
 0x12a   : > { %649 = vmatpush1.bf16.msra.mxu0 %v641_v23  ;;  %v622_v29 = vpop.permute.xlu0 %621 }
 0x12d   : > { %1099 = vmatmul.mubr.msk.bf16.vlgmr.msra.gmra.mrb[0].mxu0 %vm634_vm15, %v1128_v28 }
 0x132   : > { %v627_v32 = vpop.permute.xlu1 %626 }
 0x200   : > { %v680_v31 = vpop.f32.mrb[0].mxu0 }
 0x201   : > { %v681_v34 = vadd.f32 %v680_v31, %v622_v29  ;;  %v682_v22 = vpop.f32.mrb[1].mxu0 }
 0x202   : > { %v683_v37 = vadd.f32 %v682_v22, %v622_v29  ;;  %v684_v40 = vpop.f32.mrb[2].mxu0 }
 0x203   : > { %v689_v41 = vmax.f32 %v681_v34, 0.0  ;;  %v685_v42 = vadd.f32 %v684_v40, %v627_v32  ;;  %v686_v46 = vpop.f32.mrb[3].mxu0 }
 0x204   : > { %v690_v47 = vmax.f32 %v683_v37, 0.0  ;;  %v687_v50 = vadd.f32 %v686_v46, %v627_v32 }
 0x205   : > { %v691_v53 = vmax.f32 %v685_v42, 0.0  ;;  %703 = vrot.lane.b32.xlu0 %v689_v41, %s1155_s21  ;;  %v1403_v55 = vmul.f32 %v689_v41, %v1255_v24 }
 0x206   : > { %v692_v54 = vmax.f32 %v687_v50, 0.0  ;;  %793 = vrot.lane.b32.xlu1 %v690_v47, %s1149_s15  ;;  %v1409_v26 = vmul.f32 %v690_v47, %v1258_v25 }
 0x207   : > { %v1406_v56 = vmul.f32 %v691_v53, %v1255_v24  ;;  %v1447_v24 = vld [vmem:[%s1568_s6] sm:$0xff] }
 0x208   : > { %v1412_v59 = vmul.f32 %v692_v54, %v1258_v25  ;;  %v1101_v25 = vcombine.high %v1447_v24, %v1447_v24 }
 0x209   : > { %725 = vrot.lane.b32.xlu0 %v689_v41, %s1154_s20  ;;  %v895_v60 = vpack.c.bf16 %v1406_v56, %v1403_v55 }
 0x20a   : > { %815 = vrot.lane.b32.xlu1 %v690_v47, %s1151_s17  ;;  %v896_v61 = vpack.c.bf16 %v1412_v59, %v1409_v26  ;;  %1102 = vmatprep.mubr.msk.bf16.mxu1 %vm367_vm1, %v1101_v25 }
 0x20d   : > { %747 = vrot.lane.b32.xlu0 %v689_v41, %s1150_s16 }
 0x20e   : > { %837 = vrot.lane.b32.xlu1 %v690_v47, %s1153_s19 }
 0x211   : > { %769 = vrot.lane.b32.xlu0 %v689_v41, %s1152_s18 }
 0x212   : > { %705 = vrot.lane.b32.xlu1 %v691_v53, %s1155_s21 }
 0x215   : > { %791 = vrot.lane.b32.xlu0 %v689_v41, %s1149_s15 }
 0x216   : > { %727 = vrot.lane.b32.xlu1 %v691_v53, %s1154_s20 }
 0x219   : > { %813 = vrot.lane.b32.xlu0 %v689_v41, %s1151_s17 }
 0x21a   : > { %749 = vrot.lane.b32.xlu1 %v691_v53, %s1150_s16 }
 0x21d   : > { %835 = vrot.lane.b32.xlu0 %v689_v41, %s1153_s19 }
 0x21e   : > { %771 = vrot.lane.b32.xlu1 %v691_v53, %s1152_s18 }
 0x221   : > { %695 = vrot.lane.b32.xlu0 %v690_v47, %s1155_s21 }
 0x222   : > { %697 = vrot.lane.b32.xlu1 %v692_v54, %s1155_s21 }
 0x225   : > { %719 = vrot.lane.b32.xlu0 %v690_v47, %s1154_s20 }
 0x226   : > { %721 = vrot.lane.b32.xlu1 %v692_v54, %s1154_s20 }
 0x229   : > { %741 = vrot.lane.b32.xlu0 %v690_v47, %s1150_s16 }
 0x22a   : > { %743 = vrot.lane.b32.xlu1 %v692_v54, %s1150_s16 }
 0x22d   : > { %763 = vrot.lane.b32.xlu0 %v690_v47, %s1152_s18 }
 0x22e   : > { %765 = vrot.lane.b32.xlu1 %v692_v54, %s1152_s18 }
 0x231   : > { %857 = vrot.lane.b32.xlu0 %v689_v41, %s1156_s22 }
 0x232   : > { %859 = vrot.lane.b32.xlu1 %v690_v47, %s1156_s22 }
 0x235   : > { %795 = vrot.lane.b32.xlu0 %v691_v53, %s1149_s15 }
 0x236   : > { %797 = vrot.lane.b32.xlu1 %v692_v54, %s1149_s15 }
 0x239   : > { %817 = vrot.lane.b32.xlu0 %v691_v53, %s1151_s17 }
 0x23a   : > { %819 = vrot.lane.b32.xlu1 %v692_v54, %s1151_s17  ;;  %s1106_s17 = sshll.u32 %s1572_s28, 4 }
 0x23d   : > { %839 = vrot.lane.b32.xlu0 %v691_v53, %s1153_s19 }
 0x23e   : > { %841 = vrot.lane.b32.xlu1 %v692_v54, %s1153_s19 }
 0x241   : > { %861 = vrot.lane.b32.xlu0 %v691_v53, %s1156_s22 }
 0x242   : > { %863 = vrot.lane.b32.xlu1 %v692_v54, %s1156_s22  ;;  %s305_s22 = scalar_lea.vmem %s1570_s8, %s1106_s17 }
 0x245   : > { %937 = vperm.xlu0 %1126, %v934_v62  }
 0x277   : > { %v704_v63 = vpop.permute.xlu0 %703 }
 0x278   : > { %v1459_v0 = vpop.permute.xlu1 %793 }
 0x27b   : > { %v726_v33 = vpop.permute.xlu0 %725 }
 0x27c   : > { %v1461_v45 = vpop.permute.xlu1 %815 }
 0x27f   : > { %v748_v1 = vpop.permute.xlu0 %747 }
 0x280   : > { %v1463_v4 = vpop.permute.xlu1 %837 }
 0x283   : > { %v770_v6 = vpop.permute.xlu0 %769 }
 0x284   : > { %v706_v7 = vpop.permute.xlu1 %705 }
 0x287   : > { %v1465_v8 = vpop.permute.xlu0 %791 }
 0x288   : > { %v728_v9 = vpop.permute.xlu1 %727 }
 0x28b   : > { %v1467_v30 = vpop.permute.xlu0 %813 }
 0x28c   : > { %v750_v10 = vpop.permute.xlu1 %749  ;;  %v829_v26 = vsel %vm480_vm6, %v1461_v45, %v1467_v30 }
 0x28f   : > { %v1469_v11 = vpop.permute.xlu0 %835 }
 0x290   : > { %v772_v12 = vpop.permute.xlu1 %771  ;;  %v843_v55 = vsel %vm505_vm11, %v1469_v11, %v1463_v4  ;;  %v851_v56 = vsel %vm505_vm11, %v1463_v4, %v1469_v11 }
 0x293   : > { %v696_v19 = vpop.permute.xlu0 %695 }
 0x294   : > { %v707_v13 = vsel %vm343_vm3, %v704_v63, %v696_v19  ;;  %v713_v14 = vsel %vm343_vm3, %v696_v19, %v704_v63  ;;  %v698_v20 = vpop.permute.xlu1 %697 }
 0x295   : > { %v715_v15 = vmul.f32 %v713_v14, %v1306_v48  ;;  %v708_v16 = vsel %vm343_vm3, %v706_v7, %v698_v20  ;;  %v714_v17 = vsel %vm343_vm3, %v698_v20, %v706_v7  ;;  %v716_v18 = vmul.f32 %v707_v13, %v1309_v49 }
 0x296   : > { %v717_v21 = vmul.f32 %v714_v17, %v1306_v48  ;;  %v718_v23 = vmul.f32 %v708_v16, %v1309_v49 }
 0x297   : > { %v720_v28 = vpop.permute.xlu0 %719 }
 0x298   : > { %v729_v29 = vsel %vm367_vm1, %v726_v33, %v720_v28  ;;  %v735_v31 = vsel %vm367_vm1, %v720_v28, %v726_v33  ;;  %v722_v32 = vpop.permute.xlu1 %721  ;;  %v880_v34 = vpack.c.bf16 %v718_v23, %v716_v18  ;;  %v879_v22 = vpack.c.bf16 %v717_v21, %v715_v15 }
 0x299   : > { %v737_v37 = vmul.f32 %v735_v31, %v1287_v38  ;;  %v738_v40 = vmul.f32 %v729_v29, %v1290_v39  ;;  %v730_v41 = vsel %vm367_vm1, %v728_v9, %v722_v32  ;;  %v736_v42 = vsel %vm367_vm1, %v722_v32, %v728_v9 }
 0x29a   : > { %v739_v48 = vmul.f32 %v736_v42, %v1287_v38  ;;  %v740_v49 = vmul.f32 %v730_v41, %v1290_v39  ;;  %949 = vmatprep.subr.bf16.mxu1 %v880_v34  ;;  %v799_v28 = vsel %vm455_vm4, %v1465_v8, %v1459_v0  ;;  %v807_v29 = vsel %vm455_vm4, %v1459_v0, %v1465_v8 }
 0x29b   : > { %v742_v46 = vpop.permute.xlu0 %741  ;;  %950 = vmatpush1.bf16.msra.mxu1 %v879_v22  ;;  %v809_v32 = vmul.f32 %v799_v28, %v1315_v51  ;;  %v810_v34 = vmul.f32 %v807_v29, %v1318_v52  ;;  %v821_v0 = vsel %vm480_vm6, %v1467_v30, %v1461_v45  ;;  %v832_v42 = vmul.f32 %v829_v26, %v1326_v58 }
 0x29c   : > { %v751_v47 = vsel %vm392_vm2, %v748_v1, %v742_v46  ;;  %v757_v50 = vsel %vm392_vm2, %v742_v46, %v748_v1  ;;  %v744_v53 = vpop.permute.xlu1 %743  ;;  %v884_v54 = vpack.c.bf16 %v740_v49, %v738_v40  ;;  %v883_v25 = vpack.c.bf16 %v739_v48, %v737_v37 }
 0x29d   : > { %v759_v62 = vmul.f32 %v757_v50, %v1296_v43  ;;  %v760_v63 = vmul.f32 %v751_v47, %v1299_v44  ;;  %v752_v33 = vsel %vm392_vm2, %v750_v10, %v744_v53  ;;  %v758_v38 = vsel %vm392_vm2, %v744_v53, %v750_v10 }
 0x29e   : > { %v761_v39 = vmul.f32 %v758_v38, %v1296_v43  ;;  %v762_v7 = vmul.f32 %v752_v33, %v1299_v44  ;;  %951 = vmatprep.subr.bf16.mxu1 %v884_v54  ;;  %v831_v41 = vmul.f32 %v821_v0, %v1323_v57  ;;  %v854_v50 = vmul.f32 %v851_v56, %v1353_v27 }
 0x29f   : > { %v764_v9 = vpop.permute.xlu0 %763  ;;  %952 = vmatpush1.bf16.msra.mxu1 %v883_v25 }
 0x2a0   : > { %v773_v1 = vsel %vm417_vm0, %v770_v6, %v764_v9  ;;  %v779_v19 = vsel %vm417_vm0, %v764_v9, %v770_v6  ;;  %v766_v13 = vpop.permute.xlu1 %765  ;;  %v888_v14 = vpack.c.bf16 %v762_v7, %v760_v63  ;;  %v887_v20 = vpack.c.bf16 %v761_v39, %v759_v62 }
 0x2a1   : > { %v781_v15 = vmul.f32 %v779_v19, %v1278_v35  ;;  %v782_v16 = vmul.f32 %v773_v1, %v1281_v36  ;;  %v774_v10 = vsel %vm417_vm0, %v772_v12, %v766_v13  ;;  %v780_v43 = vsel %vm417_vm0, %v766_v13, %v772_v12 }
 0x2a2   : > { %v783_v44 = vmul.f32 %v780_v43, %v1278_v35  ;;  %v784_v17 = vmul.f32 %v774_v10, %v1281_v36  ;;  %953 = vmatprep.subr.bf16.mxu1 %v888_v14  ;;  %v1100_v13 = vcombine.low %v1447_v24, %v1447_v24 }
 0x2a3   : > { %v858_v18 = vpop.permute.xlu0 %857  ;;  %954 = vmatpush1.bf16.msra.mxu1 %v887_v20 }
 0x2a4   : > { %v860_v21 = vpop.permute.xlu1 %859  ;;  %v892_v6 = vpack.c.bf16 %v784_v17, %v782_v16  ;;  %v891_v23 = vpack.c.bf16 %v783_v44, %v781_v15 }
 0x2a5   : > { %v865_v4 = vsel %vm530_vm13, %v858_v18, %v860_v21  ;;  %v873_v11 = vsel %vm530_vm13, %v860_v21, %v858_v18 }
 0x2a6   : > { %955 = vmatprep.subr.bf16.mxu1 %v892_v6  ;;  %v875_v7 = vmul.f32 %v865_v4, %v1385_v2 }
 0x2a7   : > { %v796_v12 = vpop.permute.xlu0 %795  ;;  %956 = vmatpush1.bf16.msra.mxu1 %v891_v23 }
 0x2a8   : > { %957 = vmatprep.subr.bf16.mxu1 %v896_v61  ;;  %v798_v35 = vpop.permute.xlu1 %797 }
 0x2a9   : > { %v800_v36 = vsel %vm455_vm4, %v796_v12, %v798_v35  ;;  %v808_v31 = vsel %vm455_vm4, %v798_v35, %v796_v12 }
 0x2aa   : > { %v811_v22 = vmul.f32 %v800_v36, %v1315_v51  ;;  %v812_v37 = vmul.f32 %v808_v31, %v1318_v52 }
 0x2ab   : > { %v818_v59 = vpop.permute.xlu0 %817  ;;  %958 = vmatpush1.bf16.msra.mxu1 %v895_v60 }
 0x2ac   : > { %v820_v61 = vpop.permute.xlu1 %819  ;;  %v900_v8 = vpack.c.bf16 %v812_v37, %v810_v34  ;;  %v899_v40 = vpack.c.bf16 %v811_v22, %v809_v32 }
 0x2ad   : > { %v822_v51 = vsel %vm480_vm6, %v818_v59, %v820_v61  ;;  %v830_v52 = vsel %vm480_vm6, %v820_v61, %v818_v59 }
 0x2ae   : > { %v833_v48 = vmul.f32 %v822_v51, %v1323_v57  ;;  %v834_v45 = vmul.f32 %v830_v52, %v1326_v58  ;;  %959 = vmatprep.subr.bf16.mxu1 %v900_v8  ;;  %v853_v58 = vmul.f32 %v843_v55, %v1340_v5 }
 0x2af   : > { %v840_v60 = vpop.permute.xlu0 %839  ;;  %960 = vmatpush1.bf16.msra.mxu1 %v899_v40 }
 0x2b0   : > { %v842_v30 = vpop.permute.xlu1 %841  ;;  %v904_v49 = vpack.c.bf16 %v834_v45, %v832_v42  ;;  %v903_v46 = vpack.c.bf16 %v833_v48, %v831_v41 }
 0x2b1   : > { %v844_v47 = vsel %vm505_vm11, %v840_v60, %v842_v30  ;;  %v852_v57 = vsel %vm505_vm11, %v842_v30, %v840_v60 }
 0x2b2   : > { %v855_v53 = vmul.f32 %v844_v47, %v1340_v5  ;;  %v856_v54 = vmul.f32 %v852_v57, %v1353_v27  ;;  %961 = vmatprep.subr.bf16.mxu1 %v904_v49  ;;  %v876_v5 = vmul.f32 %v873_v11, %v1388_v3 }
 0x2b3   : > { %v862_v25 = vpop.permute.xlu0 %861  ;;  %962 = vmatpush1.bf16.msra.mxu1 %v903_v46 }
 0x2b4   : > { %v864_v62 = vpop.permute.xlu1 %863  ;;  %v908_v63 = vpack.c.bf16 %v856_v54, %v854_v50  ;;  %v907_v33 = vpack.c.bf16 %v855_v53, %v853_v58 }
 0x2b5   : > { %v866_v38 = vsel %vm530_vm13, %v862_v25, %v864_v62  ;;  %v874_v39 = vsel %vm530_vm13, %v864_v62, %v862_v25 }
 0x2b6   : > { %v877_v27 = vmul.f32 %v866_v38, %v1385_v2  ;;  %v878_v9 = vmul.f32 %v874_v39, %v1388_v3  ;;  %963 = vmatprep.subr.bf16.mxu1 %v908_v63 }
 0x2b7   : > { %964 = vmatpush1.bf16.msra.mxu1 %v907_v33 }
 0x2b8   : > { %v912_v1 = vpack.c.bf16 %v878_v9, %v876_v5  ;;  %v911_v19 = vpack.c.bf16 %v877_v27, %v875_v7 }
 0x2ba   : > { %965 = vmatprep.subr.bf16.mxu1 %v912_v1 }
 0x2bb   : > { %966 = vmatpush1.bf16.msra.mxu1 %v911_v19 }
 0x2be   : > { %982 = vmatmul.mubr.bf16.vlgmr.msra.gmra.mrb[0].mxu1 %v1100_v13 }
 0x2c4   : > { %v938_v14 = vpop.permute.xlu0 %937 }
 0x391   : > { %v983_v20 = vpop.f32.mrb[0].mxu1 }
 0x392   : > { %v984_v15 = vadd.f32 %v983_v20, %v938_v14  ;;  %v985_v16 = vpop.f32.mrb[1].mxu1 }
 0x393   : > { %v986_v10 = vadd.f32 %v985_v16, %v938_v14  ;;  %v987_v43 = vpop.f32.mrb[2].mxu1 }
 0x394   : > { %v990_v44 = vrot.slane %v984_v15, 4  ;;  %v988_v2 = vpop.f32.mrb[3].mxu1 }
 0x395   : > { %v996_v17 = vrot.slane %v986_v10, 4 }
 0x396   : > { %v991_v3 = vmax.f32 %v984_v15, %v990_v44 }
 0x397   : > { %v997_v18 = vmax.f32 %v986_v10, %v996_v17 }
 0x398   : > { %v992_v21 = vrot.slane %v991_v3, 2 }
 0x399   : > { %v998_v6 = vrot.slane %v997_v18, 2 }
 0x39a   : > { %v993_v23 = vmax.f32 %v991_v3, %v992_v21 }
 0x39b   : > { %v999_v28 = vmax.f32 %v997_v18, %v998_v6 }
 0x39c   : > { %v994_v29 = vrot.slane %v993_v23, 1 }
 0x39d   : > { %v1000_v12 = vrot.slane %v999_v28, 1 }
 0x39e   : > { %v995_v24 = vmax.f32 %v993_v23, %v994_v29 }
 0x39f   : > { %v1001_v35 = vmax.f32 %v999_v28, %v1000_v12 }
 0x3a0   : > { %v1002_v36 = vsub.f32 %v984_v15, %v995_v24 }
 0x3a1   : > { %v1003_v31 = vsub.f32 %v986_v10, %v1001_v35 }
 0x3a2   : > { %v1004_v32 = vmul.f32 1.442695, %v1002_v36 }
 0x3a3   : > { %v1006_v34 = vmul.f32 1.442695, %v1003_v31 }
 0x3a4   : > { %1131 = vpow2.f32 %v1004_v32 }
 0x3a5   : > { %1133 = vpow2.f32 %v1006_v34 }
 0x3ae   : > { %v1132_v22 = vpop.eup %1131 }
 0x3af   : > { %v1134_v37 = vpop.eup %1133  ;;  %v1008_v0 = vrot.slane %v1132_v22, 4 }
 0x3b0   : > { %v1014_v26 = vrot.slane %v1134_v37, 4 }
 0x3b1   : > { %v1009_v59 = vadd.f32 %v1132_v22, %v1008_v0 }
 0x3b2   : > { %v1015_v61 = vadd.f32 %v1134_v37, %v1014_v26 }
 0x3b3   : > { %v1010_v8 = vrot.slane %v1009_v59, 2 }
 0x3b4   : > { %v1016_v40 = vrot.slane %v1015_v61, 2 }
 0x3b5   : > { %v1011_v51 = vadd.f32 %v1010_v8, %v1009_v59 }
 0x3b6   : > { %v1017_v52 = vadd.f32 %v1016_v40, %v1015_v61 }
 0x3b7   : > { %v1012_v41 = vrot.slane %v1011_v51, 1 }
 0x3b8   : > { %v1018_v42 = vrot.slane %v1017_v52, 1 }
 0x3b9   : > { %v1013_v48 = vadd.f32 %v1012_v41, %v1011_v51 }
 0x3ba   : > { %v1019_v45 = vadd.f32 %v1018_v42, %v1017_v52 }
 0x3bb   : > { %1135 = vrcp.f32 %v1013_v48 }
 0x3bc   : > { %1137 = vrcp.f32 %v1019_v45 }
 0x3c5   : > { %v1136_v55 = vpop.eup %1135 }
 0x3c6   : > { %v1138_v56 = vpop.eup %1137  ;;  %v1021_v60 = vmul.f32 %v1136_v55, %v1132_v22 }
 0x3c7   : > { %v1023_v30 = vmul.f32 %v1138_v56, %v1134_v37 }
 0x3c8   : > { %1024 = vst [vmem:[%s305_s22] sm:$0xff] %v1021_v60 }
 0x3c9   : > { %1025 = vst [vmem:[%s305_s22 + $0x8] sm:$0xff] %v1023_v30 }
 0x3ca PF: > { %s18_s27 = sadd.s32 1, %s1145_s27  }
 0x3cb   : > { %p15_p4 = scmp.ge.s32.totalorder %s18_s27, 4  }
 0x3cd   :  { %17 = sbr.rel (!%p15_p4) target bundleno = 1 (0x1), region = 90 }

</bundles_post_ra>
